<compile_context>
chip_gen: v7x
topology: tpu7x:2x2x1
jax: 0.10.0
libtpu: 0.0.40
codegen_flags: <defaults>
</compile_context>

<pallas_src>
import math

import jax
import jax.numpy as jnp
from jax.experimental import pallas as pl
from jax.experimental.pallas import tpu as pltpu

_HALF_LOG_2PI = 0.5 * math.log(2.0 * math.pi)


def _flow_kernel(params_ref, x_ref, u_ref, logp_ref):
    """Fused Flow.forward + Flow.log_prob (minus the scalar constant) for one row tile.

    params_ref: (3, D)       rows = [inv_scale, inv_scale*inv_std, mean*inv_std]
    x_ref:      (TILE_R, D)  input rows (flattened (B*T, D))
    u_ref:      (TILE_R, D)  transformed rows (u = x / scale under the placeholder net)
    logp_ref:   (1, TILE_R)  lane-dense per-row  -0.5 * sum_d z_d^2   (constant added outside)
    """
    inv_scale = params_ref[0:1, :]      # (1, D)
    a = params_ref[1:2, :]              # inv_scale * inv_std
    b = params_ref[2:3, :]              # mean * inv_std

    x = x_ref[...]                      # (TILE_R, D)
    u_ref[...] = x * inv_scale          # Flow.forward: x /= self.scale

    # TODO(synk): self.net is None in Flow.__init__ (transform net attached externally in
    # STGNF); the placeholder net is the identity flow with log|det J| = 0, so no ladj term
    # is added to the log-density below.
    z = x * a - b                       # == (u - mean) / std
    logp_ref[...] = (-0.5 * jnp.sum(z * z, axis=-1))[None, :]


def _choose_tile_rows(rows, d, tile_bytes_budget):
    """Pick a row tile: as close to the byte budget as possible, 128-aligned, and exactly
    dividing `rows` when such a divisor exists (otherwise Pallas masks the last block)."""
    cap = max(8, tile_bytes_budget // (4 * d))
    if cap >= 128:
        cap = (cap // 128) * 128
    else:
        cap = max(8, (cap // 8) * 8)

    if rows <= cap:
        # Whole problem fits in one tile. Split into two exact, 128-aligned halves when
        # possible so v7x's two TensorCores both get a grid step; otherwise single step.
        if rows >= 256 and (rows // 2) % 128 == 0:
            return rows // 2
        return rows

    # Prefer the largest 128-aligned divisor of `rows` (no masked tail at all).
    t = cap
    while t >= 128:
        if rows % t == 0:
            return t
        t -= 128
    # No exact divisor: use the full cap; the ragged last block is masked by Pallas
    # (out-of-bounds writes dropped), so no jnp.pad copy of x is ever made.
    return cap


def flow_forward_and_log_prob(x, scale, base_dist_mean, base_dist_var,
                              *, tile_bytes_budget=4 * 1024 * 1024):
    """Returns (u, log_abs_det_jacobian, log_prob).

    x:               (B, T, D) float32
    scale:           None, scalar, or broadcastable to (D,)   (Flow.scale attribute)
    base_dist_mean:  (D,)  registered buffer (zeros)
    base_dist_var:   (D,)  registered buffer (ones); used directly as the Normal std.

    log_abs_det_jacobian is the placeholder-net zero, returned as a broadcastable
    (B, T, 1) zeros tensor (NOT a dense (B, T, D) write stream).
    """
    x = jnp.asarray(x, jnp.float32)
    B, T, D = x.shape
    R = B * T

    # Hoist all per-feature constants out of the kernel (no divides / logs in-kernel).
    if scale is None:
        inv_scale = jnp.ones((D,), jnp.float32)
    else:
        scale_v = jnp.broadcast_to(jnp.asarray(scale, jnp.float32), (D,))
        inv_scale = 1.0 / scale_v
    mean = jnp.broadcast_to(jnp.asarray(base_dist_mean, jnp.float32), (D,))
    std = jnp.broadcast_to(jnp.asarray(base_dist_var, jnp.float32), (D,))
    inv_std = 1.0 / std
    a = inv_scale * inv_std
    b = mean * inv_std
    # Scalar constant of the Gaussian log-density, added to the tiny (B, T) result outside
    # the kernel (removes the per-element broadcast add of log_const inside the tile).
    c = -(jnp.sum(jnp.log(std)) + jnp.float32(D * _HALF_LOG_2PI))
    params = jnp.stack([inv_scale, a, b], axis=0)            # (3, D)

    # TODO(synk): if the production input_size D is not a multiple of 128, pad/repack the
    # feature dim upstream once so the lane dim is 128-aligned (masked lane DMAs are slow).
    tile_r = _choose_tile_rows(R, D, tile_bytes_budget)
    grid_r = pl.cdiv(R, tile_r)

    x_flat = x.reshape(R, D)   # no padding copy: ragged last block (if any) is masked

    u_flat, logp_row = pl.pallas_call(
        _flow_kernel,
        out_shape=(
            jax.ShapeDtypeStruct((R, D), jnp.float32),   # u
            jax.ShapeDtypeStruct((1, R), jnp.float32),   # per-row -0.5*sum(z^2), lane-dense
        ),
        grid_spec=pltpu.PrefetchScalarGridSpec(
            num_scalar_prefetch=0,
            grid=(grid_r,),
            in_specs=[
                pl.BlockSpec((3, D), lambda i: (0, 0)),          # fused constants
                pl.BlockSpec((tile_r, D), lambda i: (i, 0)),     # x rows
            ],
            out_specs=[
                pl.BlockSpec((tile_r, D), lambda i: (i, 0)),     # u rows
                pl.BlockSpec((1, tile_r), lambda i: (0, i)),     # log_prob, lanes = rows
            ],
        ),
        compiler_params=pltpu.CompilerParams(
            dimension_semantics=("parallel",),
            # 40 MiB: above v5e's 16 MiB scoped default, below v7x's 64 MiB physical VMEM.
            # Working set = 2x x-tile + 2x u-tile (double-buffered) ~ 4 * tile_bytes ~ 16 MiB.
            vmem_limit_bytes=40 * 1024 * 1024,
        ),
    )(params, x_flat)

    u = u_flat.reshape(B, T, D)
    logp = logp_row.reshape(B, T) + c          # tiny (B, T) elementwise op, not a D-sized stream
    # Placeholder net: identity => log|det J| = 0, returned broadcastable instead of dense.
    ladj = jnp.zeros((B, T, 1), jnp.float32)
    return u, ladj, logp


def _reference(x, scale, mean, std_like_var):
    u = x if scale is None else x / scale
    lp = jnp.sum(
        -0.5 * ((u - mean) / std_like_var) ** 2
        - jnp.log(std_like_var) - 0.5 * jnp.log(2.0 * jnp.pi),
        axis=-1)
    return u, lp


def _check(name, x, scale, mean, var, **kw):
    u, ladj, logp = flow_forward_and_log_prob(x, scale, mean, var, **kw)
    jax.block_until_ready((u, ladj, logp))
    u_ref, lp_ref = _reference(x, scale, mean, var)
    assert jnp.allclose(u, u_ref, rtol=1e-5, atol=1e-5), f"{name}: u mismatch"
    assert jnp.allclose(ladj, 0.0, atol=1e-6), f"{name}: ladj mismatch"
    assert jnp.allclose(logp, lp_ref, rtol=1e-5, atol=1e-3), f"{name}: log_prob mismatch"


if __name__ == "__main__":
    key = jax.random.PRNGKey(0)
    D = 128                                    # input_size (lane-aligned example)
    base_dist_mean = jnp.zeros((D,), jnp.float32)   # registered buffers from Flow.__init__
    base_dist_var = jnp.ones((D,), jnp.float32)

    k1, k2, k3, ks = jax.random.split(key, 4)

    # Case 1: small batch, per-feature scale, whole problem in one tile.
    x1 = jax.random.normal(k1, (2, 8, D), dtype=jnp.float32)
    scale_vec = jnp.abs(jax.random.normal(ks, (D,), dtype=jnp.float32)) + 0.5
    _check("case1", x1, scale_vec, base_dist_mean, base_dist_var)

    # Case 2: scale=None, forced small tile budget -> 3 grid steps with a masked ragged
    # last block (exercises the no-padding path).
    x2 = jax.random.normal(k2, (3, 200, D), dtype=jnp.float32)
    _check("case2", x2, None, base_dist_mean, base_dist_var,
           tile_bytes_budget=128 * 1024)

    # Case 3: scalar scale, exact 2-step grid (two 128-row tiles, v7x megacore split).
    x3 = jax.random.normal(k3, (2, 128, D), dtype=jnp.float32)
    _check("case3", x3, 0.5, base_dist_mean, base_dist_var)

    print("KERNEL_OK")
</pallas_src>

<mosaic_0001>
module attributes {stable_mosaic.version = 11 : i64} {
  func.func @_flow_kernel(%arg0: i32, %arg1: memref<3x128xf32, #tpu.memory_space<vmem>>, %arg2: memref<16x128xf32, #tpu.memory_space<vmem>>, %arg3: memref<16x128xf32, #tpu.memory_space<vmem>>, %arg4: memref<1x16xf32, #tpu.memory_space<vmem>>) attributes {dimension_semantics = [#tpu.dimension_semantics<parallel>], iteration_bounds = array<i64: 1>, scalar_prefetch = 0 : i64, scratch_operands = 0 : i64, tpu.core_type = #tpu.core_type<tc>, window_params = [{pipeline_mode = #tpu.pipeline_mode<synchronous>, transform_indices = @transform_0, window_bounds = array<i64: 3, 128>}, {transform_indices = @transform_1, window_bounds = array<i64: 16, 128>}, {transform_indices = @transform_2, window_bounds = array<i64: 16, 128>}, {transform_indices = @transform_3, window_bounds = array<i64: 1, 16>}]} {
    %c0 = arith.constant 0 : index
    %c0_0 = arith.constant 0 : index
    %0 = vector.load %arg1[%c0, %c0_0] : memref<3x128xf32, #tpu.memory_space<vmem>>, vector<1x128xf32>
    %c1 = arith.constant 1 : index
    %c0_1 = arith.constant 0 : index
    %1 = vector.load %arg1[%c1, %c0_1] : memref<3x128xf32, #tpu.memory_space<vmem>>, vector<1x128xf32>
    %c2 = arith.constant 2 : index
    %c0_2 = arith.constant 0 : index
    %2 = vector.load %arg1[%c2, %c0_2] : memref<3x128xf32, #tpu.memory_space<vmem>>, vector<1x128xf32>
    %c0_3 = arith.constant 0 : index
    %c0_4 = arith.constant 0 : index
    %3 = vector.load %arg2[%c0_3, %c0_4] : memref<16x128xf32, #tpu.memory_space<vmem>>, vector<16x128xf32>
    %4 = vector.broadcast %0 : vector<1x128xf32> to vector<16x128xf32>
    %5 = arith.mulf %3, %4 : vector<16x128xf32>
    %c0_5 = arith.constant 0 : index
    %c0_6 = arith.constant 0 : index
    %6 = vector.load %arg3[%c0_5, %c0_6] : memref<16x128xf32, #tpu.memory_space<vmem>>, vector<16x128xf32>
    tpu.vector_store %arg3[%c0_5, %c0_6], %5 {strides = array<i32>} : memref<16x128xf32, #tpu.memory_space<vmem>>, vector<16x128xf32>,
    %7 = vector.broadcast %1 : vector<1x128xf32> to vector<16x128xf32>
    %8 = arith.mulf %3, %7 : vector<16x128xf32>
    %9 = vector.broadcast %2 : vector<1x128xf32> to vector<16x128xf32>
    %10 = arith.subf %8, %9 : vector<16x128xf32>
    %11 = arith.mulf %10, %10 : vector<16x128xf32>
    %cst = arith.constant dense<0.000000e+00> : vector<16xf32>
    %12 = vector.multi_reduction <add>, %11, %cst [1] : vector<16x128xf32> to vector<16xf32>
    %cst_7 = arith.constant -5.000000e-01 : f32
    %13 = vector.broadcast %cst_7 : f32 to vector<16xf32>
    %14 = arith.mulf %13, %12 : vector<16xf32>
    %15 = vector.shape_cast %14 : vector<16xf32> to vector<1x16xf32>
    %c0_8 = arith.constant 0 : index
    %c0_9 = arith.constant 0 : index
    %16 = vector.load %arg4[%c0_8, %c0_9] : memref<1x16xf32, #tpu.memory_space<vmem>>, vector<1x16xf32>
    tpu.vector_store %arg4[%c0_8, %c0_9], %15 {strides = array<i32>} : memref<1x16xf32, #tpu.memory_space<vmem>>, vector<1x16xf32>,
    return
  }
  func.func @transform_0(%arg0: i32) -> (i32, i32) {
    %c0_i32 = arith.constant 0 : i32
    %c0_i32_0 = arith.constant 0 : i32
    %c0_i32_1 = arith.constant 0 : i32
    return %c0_i32, %c0_i32_0 : i32, i32
  }
  func.func @transform_1(%arg0: i32) -> (i32, i32) {
    %c0_i32 = arith.constant 0 : i32
    %c0_i32_0 = arith.constant 0 : i32
    return %arg0, %c0_i32 : i32, i32
  }
  func.func @transform_2(%arg0: i32) -> (i32, i32) {
    %c0_i32 = arith.constant 0 : i32
    %c0_i32_0 = arith.constant 0 : i32
    return %arg0, %c0_i32 : i32, i32
  }
  func.func @transform_3(%arg0: i32) -> (i32, i32) {
    %c0_i32 = arith.constant 0 : i32
    %c0_i32_0 = arith.constant 0 : i32
    return %c0_i32, %arg0 : i32, i32
  }
}

</mosaic_0001>

<bundles_post_ra>
// kernel: tpu_custom_call.1
= control target key start
LH: loop header
LB: loop body
LE: loop exit
PB: predicated region body
PF: predicated region fallthrough
CT: control target
= control target key end

     0   :  { %9 = vsyncpa [#allocation3], 0  ;;  %s316_s0 = inlined_call_operand.hbm [shape: f32[3,128], index: 0, kind: input, shape index: {}]   ;;  %s317_s1 = inlined_call_operand.hbm [shape: f32[16,128], index: 1, kind: input, shape index: {}]   ;;  %s318_s2 = inlined_call_operand.hbm [shape: f32[16,128], index: 2, kind: output, shape index: {0}]   ;;  %s319_s3 = inlined_call_operand.hbm [shape: f32[1,16], index: 3, kind: output, shape index: {1}]  }
   0x1   :  { %10 = vsyncpa [#allocation6], 0 }
   0x2   :  { %11 = vsyncpa [#allocation4], 0 }
   0x3   :  { %12 = vsyncpa [#allocation9], 0  ;;  %s229_s12 = smov [#allocation2]   ;;  %s230_s14 = smov [#allocation5]  }
   0x4   :  { %s19_s13 = sshll.u32 %s229_s12, 4  ;;  %s28_s15 = sshll.u32 %s230_s14, 4  ;;  %s20_s13 = int_to_ptr.vmem [resolvable:$true] %s19_s13  ;;  %s255_s15 = int_to_ptr.vmem [resolvable:$true] %s28_s15 }
   0x5   :  { %s133_s18 = scalar_lea.hbm %s316_s0, 64 }
   0x6   :  { %p134_p0 = scmp.ne.s32.totalorder %s316_s0, %s133_s18  ;;  %p137_p1 = scmp.lt.u32.totalorder %s133_s18, %s316_s0 }
   0x8   :  { %p139_p2 = pnand %p137_p1, %p134_p0 }
   0xa   :  { %142 = shalt.err (!%p139_p2)
}
   0xb   :  { %s143_s23 = scalar_lea.vmem %s20_s13, 64  ;;  %p148_p4 = scmp.lt.s32.totalorder %s20_s13, %s20_s13 }
   0xc   :  { %p144_p3 = scmp.ne.s32.totalorder %s20_s13, %s143_s23  ;;  %p149_p5 = scmp.lt.s32.totalorder %s143_s23, %s143_s23 }
   0xe   :  { %p150_p6 = por %p149_p5, %p148_p4 }
  0x10   :  { %p151_p7 = pnand %p150_p6, %p144_p3 }
  0x12   :  { %154 = shalt.err (!%p151_p7)
}
  0x13   :  { %22 = dma.hbm_to_vmem [thread:$0]  %s316_s0, 64, %s20_s13, [#allocation3]  }
  0x14   :  { %s155_s28 = scalar_lea.hbm %s317_s1, 256 }
  0x15   :  { %p156_p8 = scmp.ne.s32.totalorder %s317_s1, %s155_s28  ;;  %p159_p9 = scmp.lt.u32.totalorder %s155_s28, %s317_s1 }
  0x17   :  { %p161_p10 = pnand %p159_p9, %p156_p8 }
  0x19   :  { %164 = shalt.err (!%p161_p10)
}
  0x1a   :  { %s165_s6 = scalar_lea.vmem %s255_s15, 256  ;;  %p170_p12 = scmp.lt.s32.totalorder %s255_s15, %s255_s15 }
  0x1b   :  { %p166_p11 = scmp.ne.s32.totalorder %s255_s15, %s165_s6  ;;  %p171_p13 = scmp.lt.s32.totalorder %s165_s6, %s165_s6 }
  0x1d   :  { %p172_p0 = por %p171_p13, %p170_p12 }
  0x1f   :  { %p173_p1 = pnand %p172_p0, %p166_p11 }
  0x21   :  { %176 = shalt.err (!%p173_p1)
}
  0x22   :  { %s231_s0 = smov 128   ;;  %s232_s7 = smov 8  }
  0x23   :  { %34 = dma.hbm_to_vmem [thread:$0]  %s317_s1, 256, %s255_s15, [#allocation6], %s231_s0, %s231_s0, %s232_s7  }
  0x24   :  { %221 = dma.done.wait [#allocation3], 64  }
  0x25   :  { %222 = vsyncadd [#allocation3], 4294967232 }
  0x26   :  { %223 = dma.done.wait [#allocation6], 256  }
  0x27   :  { %224 = vsyncadd [#allocation6], 4294967040  ;;  %v125_v0 = vld [vmem:[#allocation2 + $0x1] ss:$0 sm:$0xff]  ;;  %v126_v1 = vld [vmem:[#allocation2 + $0x2] ss:$0 sm:$0xff] }
  0x28   :  { %v44_v2 = vld [vmem:[#allocation5] sm:$0xff]  ;;  %v124_v4 = vld [vmem:[#allocation2] ss:$0 sm:$0xff]  ;;  %v45_v5 = vld [vmem:[#allocation5 + $0x8] sm:$0xff]  ;;  %s233_s1 = smov [#allocation7]  }
  0x29   :  { %v58_v3 = vmul.f32 %v125_v0, %v44_v2  ;;  %v50_v6 = vmul.f32 %v124_v4, %v44_v2  ;;  %v59_v7 = vmul.f32 %v125_v0, %v45_v5  ;;  %v51_v12 = vmul.f32 %v124_v4, %v45_v5  ;;  %s97_s10 = sshll.u32 %s233_s1, 4  ;;  %s98_s10 = int_to_ptr.vmem [resolvable:$true] %s97_s10 }
  0x2a   :  { %s177_s11 = scalar_lea.vmem %s98_s10, 256  ;;  %p182_p3 = scmp.lt.s32.totalorder %s98_s10, %s98_s10 }
  0x2b   :  { %v64_v8 = vsub.f32 %v58_v3, %v126_v1  ;;  %52 = vst [vmem:[#allocation7] sm:$0xff] %v50_v6  ;;  %v65_v9 = vsub.f32 %v59_v7, %v126_v1  ;;  %53 = vst [vmem:[#allocation7 + $0x8] sm:$0xff] %v51_v12  ;;  %p178_p2 = scmp.ne.s32.totalorder %s98_s10, %s177_s11  ;;  %p183_p4 = scmp.lt.s32.totalorder %s177_s11, %s177_s11 }
  0x2d   :  { %v66_v10 = vmul.f32 %v64_v8, %v64_v8  ;;  %v67_v11 = vmul.f32 %v65_v9, %v65_v9  ;;  %p184_p5 = por %p183_p4, %p182_p3 }
  0x2f   :  { %68 = vadd.xlane.f32.xlu0 %v66_v10  ;;  %p185_p6 = pnand %p184_p5, %p178_p2 }
  0x33   :  { %70 = vadd.xlane.f32.xlu0 %v67_v11 }
  0x34   :  { %188 = shalt.err (!%p185_p6)
}
  0x35   :  { %s189_s14 = scalar_lea.hbm %s318_s2, 256 }
  0x36   :  { %p190_p7 = scmp.ne.s32.totalorder %s318_s2, %s189_s14  ;;  %p193_p8 = scmp.lt.u32.totalorder %s189_s14, %s318_s2 }
  0x38   :  { %p195_p9 = pnand %p193_p8, %p190_p7 }
  0x3a   :  { %198 = shalt.err (!%p195_p9)
}
  0x3b   :  { %103 = dma.vmem_to_hbm [thread:$0]  %s98_s10, 256, %s318_s2, [#allocation4], %s231_s0, %s231_s0, %s232_s7   ;;  %v76_v13 = vlaneseq  ;;  %vm87_vm0 = vcmask 130112   ;;  %vm90_vm1 = vcmask 122880  }
  0x3c   :  { %s234_s21 = smov [#allocation8]  }
  0x3d   :  { %v77_v14 = vand.u32 127, %v76_v13  ;;  %v79_v15 = vshrl.u32 %v76_v13, 7  ;;  %s110_s22 = sshll.u32 %s234_s21, 4  ;;  %s111_s22 = int_to_ptr.vmem [resolvable:$true] %s110_s22 }
  0x3e   :  { %s199_s2 = scalar_lea.vmem %s111_s22, 16  ;;  %s203_s23 = scalar_lea.vmem %s111_s22, 32 }
  0x3f   :  { %v82_v16 = vadd.s32 4294967288, %v77_v14  ;;  %v80_v18 = vsub.s32 %v77_v14, %v79_v15  ;;  %p200_p10 = scmp.ne.s32.totalorder %s111_s22, %s199_s2  ;;  %p204_p11 = scmp.lt.s32.totalorder %s111_s22, %s111_s22 }
  0x40   :  { %p205_p12 = scmp.lt.s32.totalorder %s203_s23, %s199_s2 }
  0x41   :  { %v85_v20 = vsub.s32 %v82_v16, %v79_v15 }
  0x42   :  { %p206_p13 = por %p205_p12, %p204_p11 }
  0x44   :  { %p207_p0 = pnand %p206_p13, %p200_p10 }
  0xbc   :  { %v69_v17 = vpop.xlane.xlu0 %68 }
  0xbd   :  { %v72_v19 = vmul.f32 -0.5, %v69_v17 }
  0xbf   :  { %v81_v23 = vrot.slane %v72_v19, %v80_v18 }
  0xc0   :  { %v71_v21 = vpop.xlane.xlu0 %70 }
  0xc1   :  { %v73_v22 = vmul.f32 -0.5, %v71_v21 }
  0xc3   :  { %v86_v24 = vrot.slane %v73_v22, %v85_v20 }
  0xc5   :  { %v88_v25 = vsel %vm87_vm0, %v86_v24, %v81_v23 }
  0xc6   :  { %91 = vst.msk [vmem:[#allocation8] sm:$0x1] %vm90_vm1, %v88_v25 }
  0xc7   :  { %210 = shalt.err (!%p207_p0)
}
  0xc8   :  { %s211_s26 = scalar_lea.hbm %s319_s3, 16 }
  0xc9   :  { %p212_p1 = scmp.ne.s32.totalorder %s319_s3, %s211_s26  ;;  %p215_p2 = scmp.lt.u32.totalorder %s211_s26, %s319_s3 }
  0xcb   :  { %p217_p3 = pnand %p215_p2, %p212_p1 }
  0xcd   :  { %220 = shalt.err (!%p217_p3)
}
  0xce   :  { %113 = dma.vmem_to_hbm [thread:$0]  %s111_s22, 16, %s319_s3, [#allocation9]  }
  0xcf   :  { %225 = dma.done.wait [#allocation4], 256  }
  0xd0   :  { %226 = vsyncadd [#allocation4], 4294967040 }
  0xd1   :  { %227 = dma.done.wait [#allocation9], 16  }
  0xd2   :  { %228 = vsyncadd [#allocation9], 4294967280 }
  0xd3   :  { %120 = vsyncpa [#allocation3], 1 }
  0xd4   :  { %121 = vsyncpa [#allocation6], 1 }
  0xd5   :  { %122 = vsyncpa [#allocation4], 1 }
  0xd6   :  { %123 = vsyncpa [#allocation9], 1 }

</bundles_post_ra>
